<compile_context>
chip_gen: v6e
topology: v6e:2x2x1
jax: 0.10.0
libtpu: 0.0.40
codegen_flags: <defaults>
</compile_context>

<pallas_src>
import jax
import jax.numpy as jnp
from jax import lax
from jax.experimental import pallas as pl
from jax.experimental.pallas import tpu as pltpu


def _round_up(x, m):
    return ((x + m - 1) // m) * m


def _cdiv(a, b):
    return -(-a // b)


def _pick_tile(hw, batch, cap=512):
    """Tile (multiple of 128, <= cap) for the hw x hw output with a cdiv grid."""
    hw128 = _round_up(hw, 128)
    if hw128 <= cap:
        tile = hw128
    else:
        # Pick the multiple of 128 <= cap minimizing padded extent (waste),
        # preferring larger tiles on ties (better HBM roofline, fewer steps).
        best_t, best_total = 128, None
        t = cap
        while t >= 128:
            total = _cdiv(hw, t) * t
            if best_total is None or total < best_total:
                best_t, best_total = t, total
            t -= 128
        tile = best_t
    # v7x: guarantee >= 2 parallel grid programs so both TensorCores get work.
    n = _cdiv(hw, tile)
    if batch * n * n < 2 and hw128 > 128:
        tile = _round_up(_cdiv(hw, 2), 128)
    return tile


def _make_corr_kernel(lhs_rows_are_k1, resident_b, tile, compute_dtype):
    """Build the correlation tile kernel for the chosen layout."""
    if lhs_rows_are_k1:
        dims = (((1,), (0,)), ((), ()))  # (tile, c) x (c, tile) -> (tile, tile)
    else:
        dims = (((0,), (0,)), ((), ()))  # (c, tile) x (c, tile) -> (tile, tile)

    def kernel(a_ref, b_ref, o_ref):
        a_val = a_ref[...]
        if resident_b:
            # Whole (c, hw_in) row of B is resident; pull the j-th lane tile.
            j = pl.program_id(2)
            off = pl.multiple_of(j * tile, 128)
            b_val = b_ref[:, pl.ds(off, tile)]
        else:
            b_val = b_ref[...]
        if compute_dtype is not None:
            a_val = a_val.astype(compute_dtype)
            b_val = b_val.astype(compute_dtype)
        o_ref[...] = lax.dot_general(
            a_val,
            b_val,
            dimension_numbers=dims,
            preferred_element_type=jnp.float32,
        ).astype(o_ref.dtype)

    return kernel


def correlation_volume(feature_A, feature_B, compute_dtype=None):
    """Pallas implementation of CorrelationVolume.forward (inputs NCHW)."""
    b, c, h, w = feature_A.shape
    hw = h * w
    dtype = feature_A.dtype
    itemsize = jnp.dtype(dtype).itemsize

    tile = _pick_tile(hw, b)
    n_t = _cdiv(hw, tile)
    hw_in = n_t * tile  # inputs padded so operand blocks are always exact

    large_c = c >= 128
    c_pad = _round_up(c, 128) if large_c else c  # contraction extent in-kernel

    # ----- A: k1 = w1*h + h1 -------------------------------------------------
    if large_c:
        # (b, hw, c) layout: MXU-friendly LHS, no in-kernel XLU transpose.
        a_flat = jnp.transpose(feature_A, (0, 3, 2, 1)).reshape(b, hw, c)
        a_flat = jnp.pad(a_flat, ((0, 0), (0, hw_in - hw), (0, c_pad - c)))
        a_spec = pl.BlockSpec((None, tile, c_pad), lambda bi, i, j: (bi, i, 0))
    else:
        # Tiny c: keep k1 lane-dense, output-bound regime.
        a_flat = jnp.transpose(feature_A, (0, 1, 3, 2)).reshape(b, c, hw)
        a_flat = jnp.pad(a_flat, ((0, 0), (0, 0), (0, hw_in - hw)))
        a_spec = pl.BlockSpec((None, c, tile), lambda bi, i, j: (bi, 0, i))

    # ----- B: k2 = h2*w + w2 (plain flatten, lane-dense in k2) ---------------
    b_flat = feature_B.reshape(b, c, hw)
    b_flat = jnp.pad(b_flat, ((0, 0), (0, c_pad - c), (0, hw_in - hw)))

    # Hold the full (c, hw_in) B row resident per batch when its double buffer
    # fits the budget, instead of re-DMAing a tile every inner j step.
    resident_b = 2 * c_pad * hw_in * itemsize <= (16 << 20)
    if resident_b:
        b_spec = pl.BlockSpec((None, c_pad, hw_in), lambda bi, i, j: (bi, 0, 0))
    else:
        b_spec = pl.BlockSpec((None, c_pad, tile), lambda bi, i, j: (bi, 0, j))

    # ----- VMEM budget derived from the actual buffers -----------------------
    a_blk_bytes = tile * c_pad * itemsize
    b_blk_bytes = (c_pad * hw_in if resident_b else c_pad * tile) * itemsize
    o_blk_bytes = tile * tile * itemsize
    need = 2 * (a_blk_bytes + b_blk_bytes + o_blk_bytes)  # double-buffered
    vmem_limit = min(max(2 * need + (4 << 20), 16 << 20), 48 << 20)

    # ----- Cost estimate (advisory; includes repeated B reads) ---------------
    flops = 2 * b * (n_t * tile) * (n_t * tile) * c_pad
    bytes_a = b * hw_in * c_pad * itemsize                 # A fetched once per i
    bytes_b = (b if resident_b else b * n_t) * c_pad * hw_in * itemsize
    bytes_out = b * hw * hw * itemsize
    cost = pl.CostEstimate(
        flops=flops,
        transcendentals=0,
        bytes_accessed=bytes_a + bytes_b + bytes_out,
    )

    kernel = _make_corr_kernel(large_c, resident_b, tile, compute_dtype)

    feature_mul = pl.pallas_call(
        kernel,
        out_shape=jax.ShapeDtypeStruct((b, hw, hw), dtype),  # unpadded output
        grid_spec=pltpu.PrefetchScalarGridSpec(
            num_scalar_prefetch=0,
            grid=(b, n_t, n_t),
            in_specs=[a_spec, b_spec],
            out_specs=pl.BlockSpec((None, tile, tile), lambda bi, i, j: (bi, i, j)),
        ),
        compiler_params=pltpu.CompilerParams(
            dimension_semantics=("parallel", "parallel", "parallel"),
            vmem_limit_bytes=vmem_limit,
            allow_input_fusion=[True, True],
        ),
        cost_estimate=cost,
    )(a_flat, b_flat)  # (b, k1, k2) -- already in final ordering

    # (b, k1, k2) -> (b, k1, h2, w2): contiguous, free reshape (k2 = h2*w + w2).
    return feature_mul.reshape(b, hw, h, w)


def _reference(feature_A, feature_B):
    b, c, h, w = feature_A.shape
    # out[b, w1*h + h1, h2, w2] = sum_c A[b,c,h1,w1] * B[b,c,h2,w2]
    ref = jnp.einsum(
        "bcij,bcyx->bjiyx", feature_A, feature_B, precision=lax.Precision.HIGHEST
    )  # (b, w1, h1, h2, w2)
    return ref.reshape(b, h * w, h, w)


if __name__ == "__main__":
    key = jax.random.PRNGKey(0)
    corr = jax.jit(correlation_volume)

    def check(b, c, h, w):
        sub = jax.random.fold_in(key, b * 100003 + c * 1009 + h * 31 + w)
        kA, kB = jax.random.split(sub)
        fA = jax.random.normal(kA, (b, c, h, w), dtype=jnp.float32)
        fB = jax.random.normal(kB, (b, c, h, w), dtype=jnp.float32)
        out = jax.block_until_ready(corr(fA, fB))
        ref = _reference(fA, fB)
        assert out.shape == (b, h * w, h, w), (out.shape, (b, h * w, h, w))
        assert jnp.allclose(out, ref, atol=1e-3, rtol=1e-3), (b, c, h, w)

    # Primary small shape implied by the module (aligned hw, small c, resident B).
    check(2, 4, 16, 16)
    # Ragged hw=225 (masked edge output blocks, v7x 2-way split of k1/k2).
    check(1, 3, 15, 15)
    # Large-c path (pre-transposed LHS, padded contraction dim).
    check(1, 160, 8, 8)

    print("KERNEL_OK")
</pallas_src>

<mosaic_0001>
module attributes {stable_mosaic.version = 11 : i64} {
  func.func @kernel(%arg0: i32, %arg1: i32, %arg2: i32, %arg3: memref<1x4x256xf32, #tpu.memory_space<vmem>>, %arg4: memref<1x4x256xf32, #tpu.memory_space<vmem>>, %arg5: memref<1x256x256xf32, #tpu.memory_space<vmem>>) attributes {dimension_semantics = [#tpu.dimension_semantics<parallel>, #tpu.dimension_semantics<parallel>, #tpu.dimension_semantics<parallel>], iteration_bounds = array<i64: 2, 1, 1>, scalar_prefetch = 0 : i64, scratch_operands = 0 : i64, tpu.core_type = #tpu.core_type<tc>, window_params = [{transform_indices = @transform_0, window_bounds = array<i64: 1, 4, 256>}, {transform_indices = @transform_1, window_bounds = array<i64: 1, 4, 256>}, {transform_indices = @transform_2, window_bounds = array<i64: 1, 256, 256>}]} {
    %c0 = arith.constant 0 : index
    %c0_0 = arith.constant 0 : index
    %c0_1 = arith.constant 0 : index
    %0 = vector.load %arg3[%c0, %c0_0, %c0_1] : memref<1x4x256xf32, #tpu.memory_space<vmem>>, vector<1x4x256xf32>
    %1 = vector.shape_cast %0 : vector<1x4x256xf32> to vector<4x256xf32>
    %c256_i32 = arith.constant 256 : i32
    %2 = arith.muli %arg2, %c256_i32 : i32
    %3 = tpu.assume_multiple %2, 128 : i32
    %c0_2 = arith.constant 0 : index
    %c0_3 = arith.constant 0 : index
    %4 = arith.index_cast %3 : i32 to index
    %5 = vector.load %arg4[%c0_2, %c0_3, %4] : memref<1x4x256xf32, #tpu.memory_space<vmem>>, vector<1x4x256xf32>
    %6 = vector.shape_cast %5 : vector<1x4x256xf32> to vector<4x256xf32>
    %cst = arith.constant dense<0.000000e+00> : vector<256x256xf32>
    %7 = tpu.matmul %1, %6, %cst {dimension_numbers = #tpu.dot_dimension_numbers<[0], [0], [1], [1], [0, 1, 1, 1], [], []>} : vector<4x256xf32>, vector<4x256xf32>, vector<256x256xf32> -> vector<256x256xf32>
    %c0_4 = arith.constant 0 : index
    %c0_5 = arith.constant 0 : index
    %c0_6 = arith.constant 0 : index
    %8 = vector.load %arg5[%c0_4, %c0_5, %c0_6] : memref<1x256x256xf32, #tpu.memory_space<vmem>>, vector<1x256x256xf32>
    %9 = vector.shape_cast %8 : vector<1x256x256xf32> to vector<256x256xf32>
    %10 = vector.shape_cast %7 : vector<256x256xf32> to vector<1x256x256xf32>
    tpu.vector_store %arg5[%c0_4, %c0_5, %c0_6], %10 {strides = array<i32>} : memref<1x256x256xf32, #tpu.memory_space<vmem>>, vector<1x256x256xf32>,
    return
  }
  func.func @transform_0(%arg0: i32, %arg1: i32, %arg2: i32) -> (i32, i32, i32) {
    %c0_i32 = arith.constant 0 : i32
    %c0_i32_0 = arith.constant 0 : i32
    return %arg0, %c0_i32, %arg1 : i32, i32, i32
  }
  func.func @transform_1(%arg0: i32, %arg1: i32, %arg2: i32) -> (i32, i32, i32) {
    %c0_i32 = arith.constant 0 : i32
    %c0_i32_0 = arith.constant 0 : i32
    %c0_i32_1 = arith.constant 0 : i32
    return %arg0, %c0_i32, %c0_i32_0 : i32, i32, i32
  }
  func.func @transform_2(%arg0: i32, %arg1: i32, %arg2: i32) -> (i32, i32, i32) {
    %c0_i32 = arith.constant 0 : i32
    return %arg0, %arg1, %arg2 : i32, i32, i32
  }
}

</mosaic_0001>

<bundles_post_ra>
// kernel: correlation_volume.1
= control target key start
LH: loop header
LB: loop body
LE: loop exit
PB: predicated region body
PF: predicated region fallthrough
CT: control target
= control target key end

     0   :  { %s964_s9 = smov 0   ;;  %s966_s10 = smov 0   ;;  %s1134_s0 = inlined_call_operand.vmem [shape: f32[2,4,256], index: 0, kind: input, shape index: {}]   ;;  %s1135_s1 = inlined_call_operand.vmem [shape: f32[2,4,256], index: 1, kind: input, shape index: {}]   ;;  %s1136_s2 = inlined_call_operand.vmem [shape: f32[2,256,256], index: 2, kind: output, shape index: {}]  }
   0x1   :  { %s968_s11 = smov 0  }
   0x2 LB: > { %s31_s12 = sadd.s32 1, %s942_s10  ;;  %p849_p0 = scmp.ge.s32.totalorder %s946_s11, 1  ;;  %s946_s11 = sphi %s968_s11, %s12_s11   ;;  %s942_s10 = sphi %s966_s10, %s1138_s10   ;;  %s938_s9 = sphi %s964_s9, %s1137_s9  }
   0x3   : > { %p33_p1 = scmp.ge.s32.totalorder %s31_s12, 2  ;;  %p152_p2 = scmp.lt.s32.totalorder %s946_s11, 3 }
   0x5   : > { %s1140_s12 = smov (%p33_p1, %s31_s12), 0  ;;  %p153_p3 = pnand %p849_p0, %p152_p2 }
   0x6   : > { %p193_p4 = scmp.lt.s32.totalorder (!%p153_p3), %s938_s9, 1 }
   0x7   : > { %156 = sbr.rel (%p153_p3) target bundleno = 461 (0x1cd), region = 28 }
   0xc   : > { %v948_v0 = vmov 0.0   ;;  %s1142_s9 = smov (!%p193_p4, %s938_s9), 1  ;;  %vm396_vm0 = vcmask 1043456   ;;  %vm299_vm1 = vcmask 31744  }
   0xd   : > { %465 = vmatprep.mubr.f32.mxu0 %v948_v0  ;;  %561 = vmatprep.mubr.f32.mxu1 %v948_v0  ;;  %s892_s13 = sshll.u32 %s1142_s9, 3  ;;  %s894_s20 = sshll.u32 %s1142_s9, 9 }
   0xe   : > { %s200_s16 = scalar_lea.vmem %s1134_s0, %s892_s13  ;;  %s206_s19 = scalar_lea.vmem %s1135_s1, %s892_s13 }
   0xf   : > { %v223_v1 = vld [vmem:[%s200_s16] sm:$0xff]  ;;  %s1059_s23 = scalar_lea.vmem %s1136_s2, %s894_s20 }
  0x10   : > { %v229_v2 = vld [vmem:[%s206_s19] sm:$0xff]  ;;  %233 = vxpose.xlu0.b32.start.end [1/1] (short) %v223_v1, 128  ;;  %v231_v4 = vcombine.high %v223_v1, %v223_v1 }
  0x11   : > { %v298_v3 = vcombine.high %v229_v2, %v229_v2 }
  0x13   : > { %856 = vmatprep.subr.msk.mxu0 %vm396_vm0, %v298_v3  ;;  %895 = vmatprep.subr.msk.mxu1 %vm396_vm0, %v298_v3 }
  0x14   : > { %857 = vmatpush1.msk.msra.mxu0 %vm396_vm0, %v229_v2  ;;  %896 = vmatpush1.msk.msra.mxu1 %vm396_vm0, %v229_v2 }
  0x4d   : > { %265 = vxpose.xlu0.b32.start.end [1/1] (short) %v231_v4, 128 }
  0x8c   : > { %v249_v5 = vpop.trf.xlu0 }
  0x8d   : > { %858 = vmatmul.mubr.msk.f32.vlgmr.msra.gmra.mxu0 %vm299_vm1, %v249_v5 }
  0x8e   : > { %471 = vmatprep.mubr.f32.mxu0 %v948_v0 }
  0x90   : > { %v250_v6 = vpop.trf.xlu0 }
  0x91   : > { %859 = vmatmul.mubr.msk.f32.gmra.mxu0 %vm299_vm1, %v250_v6 }
  0x92   : > { %477 = vmatprep.mubr.f32.mxu0 %v948_v0 }
  0x94   : > { %v251_v7 = vpop.trf.xlu0 }
  0x95   : > { %860 = vmatmul.mubr.msk.f32.gmra.mxu0 %vm299_vm1, %v251_v7 }
  0x96   : > { %483 = vmatprep.mubr.f32.mxu0 %v948_v0 }
  0x98   : > { %v252_v8 = vpop.trf.xlu0 }
  0x99   : > { %861 = vmatmul.mubr.msk.f32.gmra.mxu0 %vm299_vm1, %v252_v8 }
  0x9a   : > { %489 = vmatprep.mubr.f32.mxu0 %v948_v0 }
  0x9c   : > { %v253_v9 = vpop.trf.xlu0 }
  0x9d   : > { %862 = vmatmul.mubr.msk.f32.gmra.mxu0 %vm299_vm1, %v253_v9 }
  0x9e   : > { %495 = vmatprep.mubr.f32.mxu0 %v948_v0 }
  0xa0   : > { %v254_v10 = vpop.trf.xlu0 }
  0xa1   : > { %863 = vmatmul.mubr.msk.f32.gmra.mxu0 %vm299_vm1, %v254_v10 }
  0xa2   : > { %501 = vmatprep.mubr.f32.mxu0 %v948_v0 }
  0xa4   : > { %v255_v11 = vpop.trf.xlu0 }
  0xa5   : > { %864 = vmatmul.mubr.msk.f32.gmra.mxu0 %vm299_vm1, %v255_v11 }
  0xa6   : > { %507 = vmatprep.mubr.f32.mxu0 %v948_v0 }
  0xa8   : > { %v256_v12 = vpop.trf.xlu0 }
  0xa9   : > { %865 = vmatmul.mubr.msk.f32.gmra.mxu0 %vm299_vm1, %v256_v12 }
  0xaa   : > { %513 = vmatprep.mubr.f32.mxu0 %v948_v0 }
  0xac   : > { %v257_v13 = vpop.trf.xlu0 }
  0xad   : > { %866 = vmatmul.mubr.msk.f32.gmra.mxu0 %vm299_vm1, %v257_v13 }
  0xae   : > { %519 = vmatprep.mubr.f32.mxu0 %v948_v0 }
  0xb0   : > { %v258_v14 = vpop.trf.xlu0 }
  0xb1   : > { %867 = vmatmul.mubr.msk.f32.gmra.mxu0 %vm299_vm1, %v258_v14 }
  0xb2   : > { %525 = vmatprep.mubr.f32.mxu0 %v948_v0 }
  0xb4   : > { %v259_v15 = vpop.trf.xlu0 }
  0xb5   : > { %868 = vmatmul.mubr.msk.f32.gmra.mxu0 %vm299_vm1, %v259_v15 }
  0xb6   : > { %531 = vmatprep.mubr.f32.mxu0 %v948_v0 }
  0xb8   : > { %v260_v16 = vpop.trf.xlu0 }
  0xb9   : > { %869 = vmatmul.mubr.msk.f32.gmra.mxu0 %vm299_vm1, %v260_v16 }
  0xba   : > { %537 = vmatprep.mubr.f32.mxu0 %v948_v0 }
  0xbc   : > { %v261_v17 = vpop.trf.xlu0 }
  0xbd   : > { %870 = vmatmul.mubr.msk.f32.gmra.mxu0 %vm299_vm1, %v261_v17 }
  0xbe   : > { %543 = vmatprep.mubr.f32.mxu0 %v948_v0 }
  0xc0   : > { %v262_v18 = vpop.trf.xlu0 }
  0xc1   : > { %871 = vmatmul.mubr.msk.f32.gmra.mxu0 %vm299_vm1, %v262_v18 }
  0xc2   : > { %549 = vmatprep.mubr.f32.mxu0 %v948_v0 }
  0xc4   : > { %v263_v19 = vpop.trf.xlu0 }
  0xc5   : > { %872 = vmatmul.mubr.msk.f32.gmra.mxu0 %vm299_vm1, %v263_v19 }
  0xc6   : > { %555 = vmatprep.mubr.f32.mxu0 %v948_v0 }
  0xc8   : > { %v264_v20 = vpop.trf.xlu0 }
  0xc9   : > { %873 = vmatmul.mubr.msk.f32.gmra.mxu0 %vm299_vm1, %v264_v20 }
  0xcc   : > { %v281_v21 = vpop.trf.xlu0 }
  0xcd   : > { %874 = vmatmul.mubr.msk.f32.vlgmr.msra.gmra.mxu1 %vm299_vm1, %v281_v21 }
  0xce   : > { %567 = vmatprep.mubr.f32.mxu1 %v948_v0 }
  0xd0   : > { %v282_v22 = vpop.trf.xlu0 }
  0xd1   : > { %875 = vmatmul.mubr.msk.f32.gmra.mxu1 %vm299_vm1, %v282_v22 }
  0xd2   : > { %573 = vmatprep.mubr.f32.mxu1 %v948_v0 }
  0xd4   : > { %v283_v23 = vpop.trf.xlu0 }
  0xd5   : > { %876 = vmatmul.mubr.msk.f32.gmra.mxu1 %vm299_vm1, %v283_v23 }
  0xd6   : > { %579 = vmatprep.mubr.f32.mxu1 %v948_v0 }
  0xd8   : > { %v284_v24 = vpop.trf.xlu0 }
  0xd9   : > { %877 = vmatmul.mubr.msk.f32.gmra.mxu1 %vm299_vm1, %v284_v24 }
  0xda   : > { %585 = vmatprep.mubr.f32.mxu1 %v948_v0 }
  0xdc   : > { %v285_v25 = vpop.trf.xlu0 }
  0xdd   : > { %878 = vmatmul.mubr.msk.f32.gmra.mxu1 %vm299_vm1, %v285_v25 }
  0xde   : > { %591 = vmatprep.mubr.f32.mxu1 %v948_v0 }
  0xe0   : > { %v286_v26 = vpop.trf.xlu0 }
  0xe1   : > { %879 = vmatmul.mubr.msk.f32.gmra.mxu1 %vm299_vm1, %v286_v26 }
  0xe2   : > { %597 = vmatprep.mubr.f32.mxu1 %v948_v0 }
  0xe4   : > { %v287_v27 = vpop.trf.xlu0 }
  0xe5   : > { %880 = vmatmul.mubr.msk.f32.gmra.mxu1 %vm299_vm1, %v287_v27 }
  0xe6   : > { %603 = vmatprep.mubr.f32.mxu1 %v948_v0 }
  0xe8   : > { %v288_v28 = vpop.trf.xlu0 }
  0xe9   : > { %881 = vmatmul.mubr.msk.f32.gmra.mxu1 %vm299_vm1, %v288_v28 }
  0xea   : > { %609 = vmatprep.mubr.f32.mxu1 %v948_v0 }
  0xec   : > { %v289_v29 = vpop.trf.xlu0 }
  0xed   : > { %882 = vmatmul.mubr.msk.f32.gmra.mxu1 %vm299_vm1, %v289_v29 }
  0xee   : > { %615 = vmatprep.mubr.f32.mxu1 %v948_v0 }
  0xf0   : > { %v290_v30 = vpop.trf.xlu0 }
  0xf1   : > { %883 = vmatmul.mubr.msk.f32.gmra.mxu1 %vm299_vm1, %v290_v30 }
  0xf2   : > { %621 = vmatprep.mubr.f32.mxu1 %v948_v0 }
  0xf4   : > { %v291_v31 = vpop.trf.xlu0 }
  0xf5   : > { %884 = vmatmul.mubr.msk.f32.gmra.mxu1 %vm299_vm1, %v291_v31 }
  0xf6   : > { %627 = vmatprep.mubr.f32.mxu1 %v948_v0 }
  0xf8   : > { %v292_v32 = vpop.trf.xlu0 }
  0xf9   : > { %885 = vmatmul.mubr.msk.f32.gmra.mxu1 %vm299_vm1, %v292_v32 }
  0xfa   : > { %633 = vmatprep.mubr.f32.mxu1 %v948_v0 }
  0xfc   : > { %v293_v33 = vpop.trf.xlu0 }
  0xfd   : > { %886 = vmatmul.mubr.msk.f32.gmra.mxu1 %vm299_vm1, %v293_v33 }
  0xfe   : > { %639 = vmatprep.mubr.f32.mxu1 %v948_v0 }
 0x100   : > { %v294_v34 = vpop.trf.xlu0 }
 0x101   : > { %887 = vmatmul.mubr.msk.f32.gmra.mxu1 %vm299_vm1, %v294_v34 }
 0x102   : > { %645 = vmatprep.mubr.f32.mxu1 %v948_v0 }
 0x104   : > { %v295_v35 = vpop.trf.xlu0 }
 0x105   : > { %888 = vmatmul.mubr.msk.f32.gmra.mxu1 %vm299_vm1, %v295_v35 }
 0x106   : > { %651 = vmatprep.mubr.f32.mxu1 %v948_v0 }
 0x108   : > { %v296_v36 = vpop.trf.xlu0 }
 0x109   : > { %889 = vmatmul.mubr.msk.f32.gmra.mxu1 %vm299_vm1, %v296_v36 }
 0x14d   : > { %v467_v37 = vpop.f32.mrf.mxu0 }
 0x14e   : > { %658 = vst [vmem:[%s1059_s23] sm:$0xff] %v467_v37 }
 0x14f   : > { %v469_v38 = vpop.f32.mrf.mxu0 }
 0x150   : > { %659 = vst [vmem:[%s1059_s23 + $0x8] sm:$0xff] %v469_v38 }
 0x151   : > { %v473_v39 = vpop.f32.mrf.mxu0 }
 0x152   : > { %660 = vst [vmem:[%s1059_s23 + $0x10] sm:$0xff] %v473_v39 }
 0x153   : > { %v475_v40 = vpop.f32.mrf.mxu0 }
 0x154   : > { %661 = vst [vmem:[%s1059_s23 + $0x18] sm:$0xff] %v475_v40 }
 0x155   : > { %v479_v41 = vpop.f32.mrf.mxu0 }
 0x156   : > { %662 = vst [vmem:[%s1059_s23 + $0x20] sm:$0xff] %v479_v41 }
 0x157   : > { %v481_v42 = vpop.f32.mrf.mxu0 }
 0x158   : > { %663 = vst [vmem:[%s1059_s23 + $0x28] sm:$0xff] %v481_v42 }
 0x159   : > { %v485_v43 = vpop.f32.mrf.mxu0 }
 0x15a   : > { %664 = vst [vmem:[%s1059_s23 + $0x30] sm:$0xff] %v485_v43 }
 0x15b   : > { %v487_v44 = vpop.f32.mrf.mxu0 }
 0x15c   : > { %665 = vst [vmem:[%s1059_s23 + $0x38] sm:$0xff] %v487_v44 }
 0x15d   : > { %v491_v45 = vpop.f32.mrf.mxu0 }
 0x15e   : > { %666 = vst [vmem:[%s1059_s23 + $0x40] sm:$0xff] %v491_v45 }
 0x15f   : > { %v493_v46 = vpop.f32.mrf.mxu0 }
 0x160   : > { %667 = vst [vmem:[%s1059_s23 + $0x48] sm:$0xff] %v493_v46 }
 0x161   : > { %v497_v47 = vpop.f32.mrf.mxu0 }
 0x162   : > { %668 = vst [vmem:[%s1059_s23 + $0x50] sm:$0xff] %v497_v47 }
 0x163   : > { %v499_v48 = vpop.f32.mrf.mxu0 }
 0x164   : > { %669 = vst [vmem:[%s1059_s23 + $0x58] sm:$0xff] %v499_v48 }
 0x165   : > { %v503_v49 = vpop.f32.mrf.mxu0 }
 0x166   : > { %670 = vst [vmem:[%s1059_s23 + $0x60] sm:$0xff] %v503_v49 }
 0x167   : > { %v505_v50 = vpop.f32.mrf.mxu0 }
 0x168   : > { %671 = vst [vmem:[%s1059_s23 + $0x68] sm:$0xff] %v505_v50 }
 0x169   : > { %v509_v51 = vpop.f32.mrf.mxu0 }
 0x16a   : > { %672 = vst [vmem:[%s1059_s23 + $0x70] sm:$0xff] %v509_v51 }
 0x16b   : > { %v511_v52 = vpop.f32.mrf.mxu0 }
 0x16c   : > { %673 = vst [vmem:[%s1059_s23 + $0x78] sm:$0xff] %v511_v52 }
 0x16d   : > { %v515_v53 = vpop.f32.mrf.mxu0 }
 0x16e   : > { %674 = vst [vmem:[%s1059_s23 + $0x80] sm:$0xff] %v515_v53 }
 0x16f   : > { %v517_v54 = vpop.f32.mrf.mxu0 }
 0x170   : > { %675 = vst [vmem:[%s1059_s23 + $0x88] sm:$0xff] %v517_v54 }
 0x171   : > { %v521_v55 = vpop.f32.mrf.mxu0 }
 0x172   : > { %676 = vst [vmem:[%s1059_s23 + $0x90] sm:$0xff] %v521_v55 }
 0x173   : > { %v523_v56 = vpop.f32.mrf.mxu0 }
 0x174   : > { %677 = vst [vmem:[%s1059_s23 + $0x98] sm:$0xff] %v523_v56 }
 0x175   : > { %v527_v57 = vpop.f32.mrf.mxu0 }
 0x176   : > { %678 = vst [vmem:[%s1059_s23 + $0xa0] sm:$0xff] %v527_v57 }
 0x177   : > { %v529_v58 = vpop.f32.mrf.mxu0 }
 0x178   : > { %679 = vst [vmem:[%s1059_s23 + $0xa8] sm:$0xff] %v529_v58 }
 0x179   : > { %v533_v59 = vpop.f32.mrf.mxu0 }
 0x17a   : > { %680 = vst [vmem:[%s1059_s23 + $0xb0] sm:$0xff] %v533_v59 }
 0x17b   : > { %v535_v60 = vpop.f32.mrf.mxu0 }
 0x17c   : > { %681 = vst [vmem:[%s1059_s23 + $0xb8] sm:$0xff] %v535_v60 }
 0x17d   : > { %v539_v61 = vpop.f32.mrf.mxu0 }
 0x17e   : > { %682 = vst [vmem:[%s1059_s23 + $0xc0] sm:$0xff] %v539_v61 }
 0x17f   : > { %v541_v62 = vpop.f32.mrf.mxu0 }
 0x180   : > { %683 = vst [vmem:[%s1059_s23 + $0xc8] sm:$0xff] %v541_v62 }
 0x181   : > { %v545_v63 = vpop.f32.mrf.mxu0 }
 0x182   : > { %684 = vst [vmem:[%s1059_s23 + $0xd0] sm:$0xff] %v545_v63 }
 0x183   : > { %v547_v0 = vpop.f32.mrf.mxu0 }
 0x184   : > { %685 = vst [vmem:[%s1059_s23 + $0xd8] sm:$0xff] %v547_v0 }
 0x185   : > { %v551_v1 = vpop.f32.mrf.mxu0 }
 0x186   : > { %686 = vst [vmem:[%s1059_s23 + $0xe0] sm:$0xff] %v551_v1 }
 0x187   : > { %v553_v2 = vpop.f32.mrf.mxu0 }
 0x188   : > { %687 = vst [vmem:[%s1059_s23 + $0xe8] sm:$0xff] %v553_v2 }
 0x189   : > { %v557_v3 = vpop.f32.mrf.mxu0 }
 0x18a   : > { %688 = vst [vmem:[%s1059_s23 + $0xf0] sm:$0xff] %v557_v3 }
 0x18b   : > { %v559_v4 = vpop.f32.mrf.mxu0 }
 0x18c   : > { %689 = vst [vmem:[%s1059_s23 + $0xf8] sm:$0xff] %v559_v4 }
 0x18d   : > { %v563_v5 = vpop.f32.mrf.mxu1 }
 0x18e   : > { %690 = vst [vmem:[%s1059_s23 + $0x100] sm:$0xff] %v563_v5 }
 0x18f   : > { %v565_v6 = vpop.f32.mrf.mxu1 }
 0x190   : > { %691 = vst [vmem:[%s1059_s23 + $0x108] sm:$0xff] %v565_v6 }
 0x191   : > { %v569_v7 = vpop.f32.mrf.mxu1 }
 0x192   : > { %692 = vst [vmem:[%s1059_s23 + $0x110] sm:$0xff] %v569_v7 }
 0x193   : > { %v571_v8 = vpop.f32.mrf.mxu1 }
 0x194   : > { %693 = vst [vmem:[%s1059_s23 + $0x118] sm:$0xff] %v571_v8 }
 0x195   : > { %v575_v9 = vpop.f32.mrf.mxu1 }
 0x196   : > { %694 = vst [vmem:[%s1059_s23 + $0x120] sm:$0xff] %v575_v9 }
 0x197   : > { %v577_v10 = vpop.f32.mrf.mxu1 }
 0x198   : > { %695 = vst [vmem:[%s1059_s23 + $0x128] sm:$0xff] %v577_v10 }
 0x199   : > { %v581_v11 = vpop.f32.mrf.mxu1 }
 0x19a   : > { %696 = vst [vmem:[%s1059_s23 + $0x130] sm:$0xff] %v581_v11 }
 0x19b   : > { %v583_v12 = vpop.f32.mrf.mxu1 }
 0x19c   : > { %697 = vst [vmem:[%s1059_s23 + $0x138] sm:$0xff] %v583_v12 }
 0x19d   : > { %v587_v13 = vpop.f32.mrf.mxu1 }
 0x19e   : > { %698 = vst [vmem:[%s1059_s23 + $0x140] sm:$0xff] %v587_v13 }
 0x19f   : > { %v589_v14 = vpop.f32.mrf.mxu1 }
 0x1a0   : > { %699 = vst [vmem:[%s1059_s23 + $0x148] sm:$0xff] %v589_v14 }
 0x1a1   : > { %v593_v15 = vpop.f32.mrf.mxu1 }
 0x1a2   : > { %700 = vst [vmem:[%s1059_s23 + $0x150] sm:$0xff] %v593_v15 }
 0x1a3   : > { %v595_v16 = vpop.f32.mrf.mxu1 }
 0x1a4   : > { %701 = vst [vmem:[%s1059_s23 + $0x158] sm:$0xff] %v595_v16 }
 0x1a5   : > { %v599_v17 = vpop.f32.mrf.mxu1 }
 0x1a6   : > { %702 = vst [vmem:[%s1059_s23 + $0x160] sm:$0xff] %v599_v17 }
 0x1a7   : > { %v601_v18 = vpop.f32.mrf.mxu1 }
 0x1a8   : > { %703 = vst [vmem:[%s1059_s23 + $0x168] sm:$0xff] %v601_v18 }
 0x1a9   : > { %v605_v19 = vpop.f32.mrf.mxu1 }
 0x1aa   : > { %704 = vst [vmem:[%s1059_s23 + $0x170] sm:$0xff] %v605_v19 }
 0x1ab   : > { %v607_v20 = vpop.f32.mrf.mxu1 }
 0x1ac   : > { %705 = vst [vmem:[%s1059_s23 + $0x178] sm:$0xff] %v607_v20 }
 0x1ad   : > { %v611_v21 = vpop.f32.mrf.mxu1 }
 0x1ae   : > { %706 = vst [vmem:[%s1059_s23 + $0x180] sm:$0xff] %v611_v21 }
 0x1af   : > { %v613_v22 = vpop.f32.mrf.mxu1 }
 0x1b0   : > { %707 = vst [vmem:[%s1059_s23 + $0x188] sm:$0xff] %v613_v22 }
 0x1b1   : > { %v617_v23 = vpop.f32.mrf.mxu1 }
 0x1b2   : > { %708 = vst [vmem:[%s1059_s23 + $0x190] sm:$0xff] %v617_v23 }
 0x1b3   : > { %v619_v24 = vpop.f32.mrf.mxu1 }
 0x1b4   : > { %709 = vst [vmem:[%s1059_s23 + $0x198] sm:$0xff] %v619_v24 }
 0x1b5   : > { %v623_v25 = vpop.f32.mrf.mxu1 }
 0x1b6   : > { %710 = vst [vmem:[%s1059_s23 + $0x1a0] sm:$0xff] %v623_v25 }
 0x1b7   : > { %v625_v26 = vpop.f32.mrf.mxu1 }
 0x1b8   : > { %711 = vst [vmem:[%s1059_s23 + $0x1a8] sm:$0xff] %v625_v26 }
 0x1b9   : > { %v629_v27 = vpop.f32.mrf.mxu1 }
 0x1ba   : > { %712 = vst [vmem:[%s1059_s23 + $0x1b0] sm:$0xff] %v629_v27 }
 0x1bb   : > { %v631_v28 = vpop.f32.mrf.mxu1 }
 0x1bc   : > { %713 = vst [vmem:[%s1059_s23 + $0x1b8] sm:$0xff] %v631_v28 }
 0x1bd   : > { %v635_v29 = vpop.f32.mrf.mxu1 }
 0x1be   : > { %714 = vst [vmem:[%s1059_s23 + $0x1c0] sm:$0xff] %v635_v29 }
 0x1bf   : > { %v637_v30 = vpop.f32.mrf.mxu1 }
 0x1c0   : > { %715 = vst [vmem:[%s1059_s23 + $0x1c8] sm:$0xff] %v637_v30 }
 0x1c1   : > { %v641_v31 = vpop.f32.mrf.mxu1 }
 0x1c2   : > { %716 = vst [vmem:[%s1059_s23 + $0x1d0] sm:$0xff] %v641_v31 }
 0x1c3   : > { %v643_v32 = vpop.f32.mrf.mxu1 }
 0x1c4   : > { %717 = vst [vmem:[%s1059_s23 + $0x1d8] sm:$0xff] %v643_v32 }
 0x1c5   : > { %v647_v33 = vpop.f32.mrf.mxu1 }
 0x1c6   : > { %718 = vst [vmem:[%s1059_s23 + $0x1e0] sm:$0xff] %v647_v33 }
 0x1c7   : > { %v649_v34 = vpop.f32.mrf.mxu1 }
 0x1c8   : > { %719 = vst [vmem:[%s1059_s23 + $0x1e8] sm:$0xff] %v649_v34 }
 0x1c9   : > { %v653_v35 = vpop.f32.mrf.mxu1 }
 0x1ca   : > { %720 = vst [vmem:[%s1059_s23 + $0x1f0] sm:$0xff] %v653_v35 }
 0x1cb   : > { %v655_v36 = vpop.f32.mrf.mxu1 }
 0x1cc   : > { %721 = vst [vmem:[%s1059_s23 + $0x1f8] sm:$0xff] %v655_v36 }
 0x1cd PF: > { %s12_s11 = sadd.s32 1, %s946_s11   ;;  %s1137_s9 = smov %s942_s10 }
 0x1ce   : > { %p9_p5 = scmp.ge.s32.totalorder %s12_s11, 4   ;;  %s1138_s10 = smov %s1140_s12 }
 0x1d0   :  { %11 = sbr.rel (!%p9_p5) target bundleno = 2 (0x2), region = 62 }

</bundles_post_ra>
